<compile_context>
chip_gen: v7x
topology: tpu7x:2x2x1
jax: 0.10.0
libtpu: 0.0.40
codegen_flags: <defaults>
</compile_context>

<pallas_src>
import jax
import jax.numpy as jnp
from jax.experimental import pallas as pl
from jax.experimental.pallas import tpu as pltpu

EPS = 1e-8  # F.cosine_similarity default eps


def _round_up(x, m):
    return (x + m - 1) // m * m


# ---------------------------------------------------------------------------
# Kernel 1: fused synthetic-encoder head
#   out = l2_normalize(X @ W, axis=1), tiled over (rows, K) with an accumulator.
#   (matches `feat = model(x).embeds; feat = feat / feat.norm(dim=1, keepdim=True)`)
# ---------------------------------------------------------------------------
def _encode_kernel(x_ref, w_ref, o_ref, acc_ref):
    @pl.when(pl.program_id(1) == 0)
    def _init():
        acc_ref[...] = jnp.zeros_like(acc_ref)

    acc_ref[...] += jnp.dot(x_ref[...], w_ref[...],
                            preferred_element_type=jnp.float32)

    @pl.when(pl.program_id(1) == pl.num_programs(1) - 1)
    def _finalize():
        y = acc_ref[...]
        sumsq = jnp.sum(y * y, axis=1, keepdims=True)
        # reference does feat / feat.norm() with no eps; rsqrt keeps it on the EUP
        o_ref[...] = (y * jax.lax.rsqrt(sumsq)).astype(o_ref.dtype)


def encode(x, w, *, tb=None, tk=None):
    """Project rows of x by w and L2-normalize.  x:(N,K), w:(K,D) -> (Np,D) f32."""
    N, K = x.shape
    Kw, D = w.shape
    assert Kw == K
    if tb is None:
        tb = N if N <= 256 else 256          # row tile (multiple of 8 or full)
    if tk is None:
        tk = K if K <= 2048 else 2048        # reduction tile (multiple of 128 or full)
    Np, Kp = _round_up(N, tb), _round_up(K, tk)
    if (Np, Kp) != (N, K):
        x = jnp.pad(x, ((0, Np - N), (0, Kp - K)))
    if Kp != K:
        w = jnp.pad(w, ((0, Kp - K), (0, 0)))

    xb = jnp.dtype(x.dtype).itemsize
    wb = jnp.dtype(w.dtype).itemsize
    # double-buffered x/w tiles + double-buffered output tile + f32 accumulator
    est = 2 * tb * tk * xb + 2 * tk * D * wb + 3 * tb * D * 4
    vmem_limit = int(min(max(2 * est, 8 << 20), 48 << 20))

    return pl.pallas_call(
        _encode_kernel,
        out_shape=jax.ShapeDtypeStruct((Np, D), jnp.float32),
        grid_spec=pltpu.PrefetchScalarGridSpec(
            num_scalar_prefetch=0,
            grid=(Np // tb, Kp // tk),
            in_specs=[
                pl.BlockSpec((tb, tk), lambda i, k: (i, k)),
                pl.BlockSpec((tk, D), lambda i, k: (k, 0)),
            ],
            out_specs=pl.BlockSpec((tb, D), lambda i, k: (i, 0)),
            scratch_shapes=[pltpu.VMEM((tb, D), jnp.float32)],
        ),
        compiler_params=pltpu.CompilerParams(
            dimension_semantics=("parallel", "arbitrary"),
            vmem_limit_bytes=vmem_limit,
        ),
    )(x, w)


# ---------------------------------------------------------------------------
# Kernel 2: all similarities fused, one (B, 6) output slab.
#   img_feats = [img1; img2] stacked rows, txt_feats = [txt1; txt2; tzs1; tzs2].
# ---------------------------------------------------------------------------
def _make_sim_kernel(B):
    def _sim_kernel(imgf_ref, txtf_ref, out_ref):
        img1 = imgf_ref[0 * B:1 * B, :]
        img2 = imgf_ref[1 * B:2 * B, :]
        txt1 = txtf_ref[0 * B:1 * B, :]
        txt2 = txtf_ref[1 * B:2 * B, :]
        tzs1 = txtf_ref[2 * B:3 * B, :]
        tzs2 = txtf_ref[3 * B:4 * B, :]

        def rowdot(a, b):
            return jnp.sum(a * b, axis=1, keepdims=True)   # (B, 1)

        # encoder outputs are already unit-norm -> cosine == dot product
        text_sim = rowdot(txt1, txt2)
        image_sim = rowdot(img1, img2)
        cond_sim = rowdot(img2, txt2)
        uncond_sim = rowdot(img2, txt1)

        # directional cosine: the differences are NOT unit-norm -> full cosine,
        # with torch's per-norm eps clamp: dot / (max(|a|,eps) * max(|b|,eps))
        d_img = img2 - img1
        d_txt = txt2 - txt1
        inv = (jax.lax.rsqrt(jnp.maximum(rowdot(d_img, d_img), EPS * EPS)) *
               jax.lax.rsqrt(jnp.maximum(rowdot(d_txt, d_txt), EPS * EPS)))
        dir_sim = rowdot(d_img, d_txt) * inv

        # softmax([unc, cnd], dim=1)[:, 1] == sigmoid(cnd - unc)
        # (reference forward uses unit temperature — no CLIP logit_scale — so we match it)
        unc = rowdot(img2, tzs1)
        cnd = rowdot(img2, tzs2)
        zs = 1.0 / (1.0 + jnp.exp(unc - cnd))

        out_ref[:, 0:1] = text_sim
        out_ref[:, 1:2] = image_sim
        out_ref[:, 2:3] = cond_sim
        out_ref[:, 3:4] = uncond_sim
        out_ref[:, 4:5] = dir_sim
        out_ref[:, 5:6] = zs

    return _sim_kernel


def similarities(img_feats, txt_feats, B):
    vmem = pl.BlockSpec(memory_space=pltpu.MemorySpace.VMEM)
    return pl.pallas_call(
        _make_sim_kernel(B),
        out_shape=jax.ShapeDtypeStruct((B, 6), jnp.float32),
        in_specs=[vmem, vmem],
        out_specs=vmem,
    )(img_feats, txt_feats)


# ---------------------------------------------------------------------------
# Wrapper reproducing DirectionalSimilarity.forward on synthetic encoders
# ---------------------------------------------------------------------------
def directional_similarity_forward(image_one, image_two,
                                   cap_one, cap_two, cap_zs_one, cap_zs_two,
                                   w_img, w_txt):
    B = image_one.shape[0]
    # Stack both images / all four captions so each projection weight is streamed
    # from HBM exactly once and only two encode launches are needed.
    x_img = jnp.concatenate([image_one.reshape(B, -1),
                             image_two.reshape(B, -1)], axis=0)
    x_txt = jnp.concatenate([cap_one, cap_two, cap_zs_one, cap_zs_two], axis=0)

    # bf16 MXU operands (f32 accumulation inside the kernel), f32 features out.
    img_feats = encode(x_img.astype(jnp.bfloat16), w_img.astype(jnp.bfloat16))
    txt_feats = encode(x_txt.astype(jnp.bfloat16), w_txt.astype(jnp.bfloat16))

    slab = similarities(img_feats, txt_feats, B)   # (B, 6)
    return {
        'text_similarity': slab[:, 0],
        'image_similarity': slab[:, 1],
        'conditional_similarity': slab[:, 2],
        'unconditional_similarity': slab[:, 3],
        'directional_similarity': slab[:, 4],
        'conditional_zero_shot_score': slab[:, 5],
    }


if __name__ == "__main__":
    key = jax.random.PRNGKey(0)
    kimg1, kimg2, kc1, kc2, kz1, kz2, kwimg, kwtxt = jax.random.split(key, 8)

    B, C, H, W = 2, 4, 16, 16        # NCHW images
    TXT_HIDDEN = 32                  # pooled text-tower hidden size (synthetic)
    D = 128                          # projection / embedding dim (multiple of 128)

    image_one = jax.random.normal(kimg1, (B, C, H, W), dtype=jnp.float32)
    image_two = jax.random.normal(kimg2, (B, C, H, W), dtype=jnp.float32)
    caption_one = jax.random.normal(kc1, (B, TXT_HIDDEN), dtype=jnp.float32)
    caption_two = jax.random.normal(kc2, (B, TXT_HIDDEN), dtype=jnp.float32)
    caption_zs_one = jax.random.normal(kz1, (B, TXT_HIDDEN), dtype=jnp.float32)
    caption_zs_two = jax.random.normal(kz2, (B, TXT_HIDDEN), dtype=jnp.float32)

    # deterministic synthetic projection weights (stand-ins for CLIP projection heads)
    w_img = jax.random.normal(kwimg, (C * H * W, D), dtype=jnp.float32) * 0.02
    w_txt = jax.random.normal(kwtxt, (TXT_HIDDEN, D), dtype=jnp.float32) * 0.02

    out = directional_similarity_forward(
        image_one, image_two, caption_one, caption_two,
        caption_zs_one, caption_zs_two, w_img, w_txt)
    jax.block_until_ready(out)
    print("KERNEL_OK")
</pallas_src>

<mosaic_0001>
module attributes {stable_mosaic.version = 11 : i64} {
  func.func @_encode_kernel(%arg0: i32, %arg1: i32, %arg2: memref<4x1024xbf16, #tpu.memory_space<vmem>>, %arg3: memref<1024x128xbf16, #tpu.memory_space<vmem>>, %arg4: memref<4x128xf32, #tpu.memory_space<vmem>>, %arg5: memref<4x128xf32, #tpu.memory_space<vmem>>) attributes {dimension_semantics = [#tpu.dimension_semantics<parallel>, #tpu.dimension_semantics<arbitrary>], iteration_bounds = array<i64: 1, 1>, scalar_prefetch = 0 : i64, scratch_operands = 1 : i64, tpu.core_type = #tpu.core_type<tc>, window_params = [{transform_indices = @transform_0, window_bounds = array<i64: 4, 1024>}, {transform_indices = @transform_1, window_bounds = array<i64: 1024, 128>}, {transform_indices = @transform_2, window_bounds = array<i64: 4, 128>}]} {
    %c0_i32 = arith.constant 0 : i32
    %0 = arith.cmpi eq, %arg1, %c0_i32 : i32
    %1 = arith.extui %0 : i1 to i32
    %c0_i32_0 = arith.constant 0 : i32
    %2 = arith.cmpi ne, %1, %c0_i32_0 : i32
    scf.if %2 {
      %cst_10 = arith.constant 0.000000e+00 : f32
      %12 = vector.broadcast %cst_10 : f32 to vector<4x128xf32>
      %c0_11 = arith.constant 0 : index
      %c0_12 = arith.constant 0 : index
      %13 = vector.load %arg5[%c0_11, %c0_12] : memref<4x128xf32, #tpu.memory_space<vmem>>, vector<4x128xf32>
      tpu.vector_store %arg5[%c0_11, %c0_12], %12 {strides = array<i32>} : memref<4x128xf32, #tpu.memory_space<vmem>>, vector<4x128xf32>,
    } else {
    }
    %c0 = arith.constant 0 : index
    %c0_1 = arith.constant 0 : index
    %3 = vector.load %arg5[%c0, %c0_1] : memref<4x128xf32, #tpu.memory_space<vmem>>, vector<4x128xf32>
    %c0_2 = arith.constant 0 : index
    %c0_3 = arith.constant 0 : index
    %4 = vector.load %arg2[%c0_2, %c0_3] : memref<4x1024xbf16, #tpu.memory_space<vmem>>, vector<4x1024xbf16>
    %c0_4 = arith.constant 0 : index
    %c0_5 = arith.constant 0 : index
    %5 = vector.load %arg3[%c0_4, %c0_5] : memref<1024x128xbf16, #tpu.memory_space<vmem>>, vector<1024x128xbf16>
    %cst = arith.constant dense<0.000000e+00> : vector<4x128xf32>
    %6 = tpu.matmul %4, %5, %cst {dimension_numbers = #tpu.dot_dimension_numbers<[1], [0], [0], [1], [0, 0, 1, 1], [], []>} : vector<4x1024xbf16>, vector<1024x128xbf16>, vector<4x128xf32> -> vector<4x128xf32>
    %7 = arith.addf %3, %6 : vector<4x128xf32>
    %c0_6 = arith.constant 0 : index
    %c0_7 = arith.constant 0 : index
    %8 = vector.load %arg5[%c0_6, %c0_7] : memref<4x128xf32, #tpu.memory_space<vmem>>, vector<4x128xf32>
    tpu.vector_store %arg5[%c0_6, %c0_7], %7 {strides = array<i32>} : memref<4x128xf32, #tpu.memory_space<vmem>>, vector<4x128xf32>,
    %c0_i32_8 = arith.constant 0 : i32
    %9 = arith.cmpi eq, %arg1, %c0_i32_8 : i32
    %10 = arith.extui %9 : i1 to i32
    %c0_i32_9 = arith.constant 0 : i32
    %11 = arith.cmpi ne, %10, %c0_i32_9 : i32
    scf.if %11 {
      %c0_10 = arith.constant 0 : index
      %c0_11 = arith.constant 0 : index
      %12 = vector.load %arg5[%c0_10, %c0_11] : memref<4x128xf32, #tpu.memory_space<vmem>>, vector<4x128xf32>
      %13 = arith.mulf %12, %12 : vector<4x128xf32>
      %cst_12 = arith.constant dense<0.000000e+00> : vector<4xf32>
      %14 = vector.multi_reduction <add>, %13, %cst_12 [1] : vector<4x128xf32> to vector<4xf32>
      %15 = vector.shape_cast %14 : vector<4xf32> to vector<4x1xf32>
      %16 = math.rsqrt %15 : vector<4x1xf32>
      %17 = vector.broadcast %16 : vector<4x1xf32> to vector<4x128xf32>
      %18 = arith.mulf %12, %17 : vector<4x128xf32>
      %c0_13 = arith.constant 0 : index
      %c0_14 = arith.constant 0 : index
      %19 = vector.load %arg4[%c0_13, %c0_14] : memref<4x128xf32, #tpu.memory_space<vmem>>, vector<4x128xf32>
      tpu.vector_store %arg4[%c0_13, %c0_14], %18 {strides = array<i32>} : memref<4x128xf32, #tpu.memory_space<vmem>>, vector<4x128xf32>,
    } else {
    }
    return
  }
  func.func @transform_0(%arg0: i32, %arg1: i32) -> (i32, i32) {
    %c0_i32 = arith.constant 0 : i32
    return %arg0, %arg1 : i32, i32
  }
  func.func @transform_1(%arg0: i32, %arg1: i32) -> (i32, i32) {
    %c0_i32 = arith.constant 0 : i32
    %c0_i32_0 = arith.constant 0 : i32
    return %arg1, %c0_i32 : i32, i32
  }
  func.func @transform_2(%arg0: i32, %arg1: i32) -> (i32, i32) {
    %c0_i32 = arith.constant 0 : i32
    %c0_i32_0 = arith.constant 0 : i32
    return %arg0, %c0_i32 : i32, i32
  }
}

</mosaic_0001>

<bundles_post_ra>
// kernel: tpu_custom_call.1
= control target key start
LH: loop header
LB: loop body
LE: loop exit
PB: predicated region body
PF: predicated region fallthrough
CT: control target
= control target key end

     0   :  { %7 = vsyncpa [#allocation4], 0  ;;  %s1163_s0 = inlined_call_operand.hbm [shape: bf16[4,1024], index: 0, kind: input, shape index: {}]   ;;  %s1164_s1 = inlined_call_operand.hbm [shape: bf16[1024,128], index: 1, kind: input, shape index: {}]   ;;  %s1165_s2 = inlined_call_operand.hbm [shape: f32[4,128], index: 2, kind: output, shape index: {}]  }
   0x1   :  { %8 = vsyncpa [#allocation7], 0 }
   0x2   :  { %9 = vsyncpa [#allocation5], 0  ;;  %s1092_s9 = smov [#allocation3]   ;;  %s1093_s11 = smov [#allocation6]  }
   0x3   :  { %s16_s10 = sshll.u32 %s1092_s9, 4  ;;  %s25_s12 = sshll.u32 %s1093_s11, 4  ;;  %s17_s10 = int_to_ptr.vmem [resolvable:$true] %s16_s10  ;;  %s1114_s12 = int_to_ptr.vmem [resolvable:$true] %s25_s12 }
   0x4   :  { %s1020_s15 = scalar_lea.hbm %s1163_s0, 256 }
   0x5   :  { %p1021_p0 = scmp.ne.s32.totalorder %s1163_s0, %s1020_s15  ;;  %p1024_p1 = scmp.lt.u32.totalorder %s1020_s15, %s1163_s0 }
   0x7   :  { %p1026_p2 = pnand %p1024_p1, %p1021_p0 }
   0x9   :  { %1029 = shalt.err (!%p1026_p2)
}
   0xa   :  { %s1030_s20 = scalar_lea.vmem %s17_s10, 256  ;;  %p1035_p4 = scmp.lt.s32.totalorder %s17_s10, %s17_s10 }
   0xb   :  { %p1031_p3 = scmp.ne.s32.totalorder %s17_s10, %s1030_s20  ;;  %p1036_p5 = scmp.lt.s32.totalorder %s1030_s20, %s1030_s20 }
   0xd   :  { %p1037_p6 = por %p1036_p5, %p1035_p4 }
   0xf   :  { %p1038_p7 = pnand %p1037_p6, %p1031_p3 }
  0x11   :  { %1041 = shalt.err (!%p1038_p7)
}
  0x12   :  { %19 = dma.hbm_to_vmem [thread:$0]  %s1163_s0, 256, %s17_s10, [#allocation4]  }
  0x13   :  { %s1042_s25 = scalar_lea.hbm %s1164_s1, 8192 }
  0x14   :  { %p1043_p8 = scmp.ne.s32.totalorder %s1164_s1, %s1042_s25  ;;  %p1046_p9 = scmp.lt.u32.totalorder %s1042_s25, %s1164_s1 }
  0x16   :  { %p1048_p10 = pnand %p1046_p9, %p1043_p8 }
  0x18   :  { %1051 = shalt.err (!%p1048_p10)
}
  0x19   :  { %s1052_s30 = scalar_lea.vmem %s1114_s12, 8192  ;;  %p1057_p12 = scmp.lt.s32.totalorder %s1114_s12, %s1114_s12 }
  0x1a   :  { %p1053_p11 = scmp.ne.s32.totalorder %s1114_s12, %s1052_s30  ;;  %p1058_p13 = scmp.lt.s32.totalorder %s1052_s30, %s1052_s30 }
  0x1c   :  { %p1059_p0 = por %p1058_p13, %p1057_p12 }
  0x1e   :  { %p1060_p1 = pnand %p1059_p0, %p1053_p11 }
  0x20   :  { %1063 = shalt.err (!%p1060_p1)
}
  0x21   :  { %s1094_s0 = smov 64   ;;  %s1095_s3 = smov 4  }
  0x22   :  { %31 = dma.hbm_to_vmem [thread:$0]  %s1164_s1, 8192, %s1114_s12, [#allocation7], %s1094_s0, %s1094_s0, %s1095_s3  }
  0x23   :  { %1086 = dma.done.wait [#allocation4], 256  }
  0x24   :  { %1087 = vsyncadd [#allocation4], 4294967040 }
  0x25   :  { %1088 = dma.done.wait [#allocation7], 8192  }
  0x26   :  { %1089 = vsyncadd [#allocation7], 4294959104  ;;  %v952_v0 = vld [vmem:[#allocation6 + $0x40] sm:$0xff]   ;;  %v956_v4 = vld [vmem:[#allocation6 + $0x48] sm:$0xff]   ;;  %v1096_v22 = vmov 1983009808   ;;  %v181_v24 = vlaneseq }
  0x27   :  { %v953_v1 = vld [vmem:[#allocation6 + $0xc0] sm:$0xff]   ;;  %857 = vmatprep.subr.bf16.mxu0 %v952_v0  ;;  %v957_v5 = vld [vmem:[#allocation6 + $0xc8] sm:$0xff]   ;;  %v960_v8 = vld [vmem:[#allocation6 + $0x50] sm:$0xff]   ;;  %v179_v23 = vunpack.c.l.s4 %v1096_v22  ;;  %vm770_vm0 = vcmask 1043456   ;;  %s1098_s1 = smov [#allocation8]  }
  0x28   :  { %v954_v2 = vld [vmem:[#allocation6] sm:$0xff]   ;;  %879 = vmatprep.subr.bf16.mxu1 %v953_v1  ;;  %v958_v6 = vld [vmem:[#allocation6 + $0x8] sm:$0xff]   ;;  %v961_v9 = vld [vmem:[#allocation6 + $0xd0] sm:$0xff]   ;;  %v182_v30 = vshrl.u32 %v181_v24, 7  ;;  %s783_s6 = sshll.u32 %s1098_s1, 4  ;;  %s784_s6 = int_to_ptr.vmem [resolvable:$true] %s783_s6 }
  0x29   :  { %v955_v3 = vld [vmem:[#allocation6 + $0x80] sm:$0xff]   ;;  %858 = vmatpush3.bf16.msra.mxu0 %v954_v2  ;;  %v959_v7 = vld [vmem:[#allocation6 + $0x88] sm:$0xff]   ;;  %v962_v10 = vld [vmem:[#allocation6 + $0x10] sm:$0xff]   ;;  %v180_v29 = vunpack.c.0.s8 %v179_v23  ;;  %s1064_s7 = scalar_lea.vmem %s784_s6, 64  ;;  %p1069_p3 = scmp.lt.s32.totalorder %s784_s6, %s784_s6 }
  0x2a   :  { %880 = vmatpush3.bf16.msra.mxu1 %v955_v3  ;;  %859 = vmatprep.subr.bf16.mxu0 %v956_v4  ;;  %v963_v11 = vld [vmem:[#allocation6 + $0x90] sm:$0xff]   ;;  %v964_v12 = vld [vmem:[#allocation6 + $0x58] sm:$0xff]   ;;  %v968_v16 = vld [vmem:[#allocation6 + $0x60] sm:$0xff]   ;;  %p1065_p2 = scmp.ne.s32.totalorder %s784_s6, %s1064_s7  ;;  %p1070_p4 = scmp.lt.s32.totalorder %s1064_s7, %s1064_s7 }
  0x2b   :  { %881 = vmatprep.subr.bf16.mxu1 %v957_v5  ;;  %v965_v13 = vld [vmem:[#allocation6 + $0xd8] sm:$0xff]   ;;  %v969_v17 = vld [vmem:[#allocation6 + $0xe0] sm:$0xff]   ;;  %v972_v20 = vld [vmem:[#allocation6 + $0x68] sm:$0xff]   ;;  %v1145_v35 = vsub.s32 %v180_v29, %v182_v30 }
  0x2c   :  { %v966_v14 = vld [vmem:[#allocation6 + $0x18] sm:$0xff]   ;;  %v970_v18 = vld [vmem:[#allocation6 + $0x20] sm:$0xff]   ;;  %v973_v21 = vld [vmem:[#allocation6 + $0xe8] sm:$0xff]   ;;  %p1071_p5 = por %p1070_p4, %p1069_p3 }
  0x2d   :  { %860 = vmatpush3.bf16.msra.mxu0 %v958_v6  ;;  %v967_v15 = vld [vmem:[#allocation6 + $0x98] sm:$0xff]   ;;  %v971_v19 = vld [vmem:[#allocation6 + $0xa0] sm:$0xff]   ;;  %v974_v25 = vld [vmem:[#allocation6 + $0x28] sm:$0xff]  }
  0x2e   :  { %882 = vmatpush3.bf16.msra.mxu1 %v959_v7  ;;  %861 = vmatprep.subr.bf16.mxu0 %v960_v8  ;;  %v975_v26 = vld [vmem:[#allocation6 + $0xa8] sm:$0xff]   ;;  %v976_v27 = vld [vmem:[#allocation6 + $0x70] sm:$0xff]   ;;  %v980_v33 = vld [vmem:[#allocation6 + $0x78] sm:$0xff]   ;;  %p1072_p6 = pnand %p1071_p5, %p1065_p2 }
  0x2f   :  { %883 = vmatprep.subr.bf16.mxu1 %v961_v9  ;;  %v977_v28 = vld [vmem:[#allocation6 + $0xf0] sm:$0xff]   ;;  %v981_v34 = vld [vmem:[#allocation6 + $0xf8] sm:$0xff]   ;;  %v985_v41 = vld [vmem:[#allocation6 + $0x140] sm:$0xff]  }
  0x30   :  { %v978_v31 = vld [vmem:[#allocation6 + $0x30] sm:$0xff]   ;;  %v982_v36 = vld [vmem:[#allocation6 + $0x38] sm:$0xff]   ;;  %v986_v42 = vld [vmem:[#allocation6 + $0x1c0] sm:$0xff]  }
  0x31   :  { %862 = vmatpush3.bf16.msra.mxu0 %v962_v10  ;;  %v979_v32 = vld [vmem:[#allocation6 + $0xb0] sm:$0xff]   ;;  %v983_v37 = vld [vmem:[#allocation6 + $0xb8] sm:$0xff]   ;;  %v987_v45 = vld [vmem:[#allocation6 + $0x100] sm:$0xff]  }
  0x32   :  { %884 = vmatpush3.bf16.msra.mxu1 %v963_v11  ;;  %863 = vmatprep.subr.bf16.mxu0 %v964_v12  ;;  %v45_v38 = vld [vmem:[#allocation3] sm:$0xff]  ;;  %v988_v46 = vld [vmem:[#allocation6 + $0x180] sm:$0xff]   ;;  %v989_v48 = vld [vmem:[#allocation6 + $0x148] sm:$0xff]  }
  0x33   :  { %885 = vmatprep.subr.bf16.mxu1 %v965_v13  ;;  %v184_v39 = vrot.slane %v45_v38, %v1145_v35  ;;  %v177_v40 = vcombine.high %v45_v38, %v45_v38  ;;  %v990_v49 = vld [vmem:[#allocation6 + $0x1c8] sm:$0xff]   ;;  %v993_v52 = vld [vmem:[#allocation6 + $0x150] sm:$0xff]   ;;  %v997_v56 = vld [vmem:[#allocation6 + $0x158] sm:$0xff]  }
  0x34   :  { %v991_v50 = vld [vmem:[#allocation6 + $0x108] sm:$0xff]   ;;  %v994_v53 = vld [vmem:[#allocation6 + $0x1d0] sm:$0xff]   ;;  %v998_v57 = vld [vmem:[#allocation6 + $0x1d8] sm:$0xff]  }
  0x35   :  { %864 = vmatpush3.bf16.msra.mxu0 %v966_v14  ;;  %v192_v43 = vcombine.high %v184_v39, %v184_v39  ;;  %v191_v44 = vrot.slane %v177_v40, %v1145_v35  ;;  %v992_v51 = vld [vmem:[#allocation6 + $0x188] sm:$0xff]   ;;  %v995_v54 = vld [vmem:[#allocation6 + $0x110] sm:$0xff]   ;;  %v999_v58 = vld [vmem:[#allocation6 + $0x118] sm:$0xff]  }
  0x36   :  { %886 = vmatpush3.bf16.msra.mxu1 %v967_v15  ;;  %865 = vmatprep.subr.bf16.mxu0 %v968_v16  ;;  %v996_v55 = vld [vmem:[#allocation6 + $0x190] sm:$0xff]   ;;  %v1000_v59 = vld [vmem:[#allocation6 + $0x198] sm:$0xff]   ;;  %v1001_v60 = vld [vmem:[#allocation6 + $0x160] sm:$0xff]  }
  0x37   :  { %887 = vmatprep.subr.bf16.mxu1 %v969_v17  ;;  %635 = vmatprep.mubr.bf16.mxu0 %v192_v43  ;;  %v193_v47 = vcombine.high %v191_v44, %v191_v44  ;;  %v1002_v61 = vld [vmem:[#allocation6 + $0x1e0] sm:$0xff]   ;;  %v1005_v0 = vld [vmem:[#allocation6 + $0x168] sm:$0xff]   ;;  %v1009_v4 = vld [vmem:[#allocation6 + $0x170] sm:$0xff]  }
  0x38   :  { %v1003_v62 = vld [vmem:[#allocation6 + $0x120] sm:$0xff]   ;;  %v1006_v1 = vld [vmem:[#allocation6 + $0x1e8] sm:$0xff]   ;;  %v1010_v5 = vld [vmem:[#allocation6 + $0x1f0] sm:$0xff]  }
  0x39   :  { %866 = vmatpush3.bf16.msra.mxu0 %v970_v18  ;;  %675 = vmatprep.mubr.bf16.mxu1 %v193_v47  ;;  %v1004_v63 = vld [vmem:[#allocation6 + $0x1a0] sm:$0xff]   ;;  %v1007_v2 = vld [vmem:[#allocation6 + $0x128] sm:$0xff]   ;;  %v1011_v6 = vld [vmem:[#allocation6 + $0x130] sm:$0xff]   ;;  %v1097_v18 = vmov 0.0  }
  0x3a   :  { %888 = vmatpush3.bf16.msra.mxu1 %v971_v19  ;;  %867 = vmatprep.subr.bf16.mxu0 %v972_v20  ;;  %v1008_v3 = vld [vmem:[#allocation6 + $0x1a8] sm:$0xff]   ;;  %v1012_v7 = vld [vmem:[#allocation6 + $0x1b0] sm:$0xff]   ;;  %v1013_v8 = vld [vmem:[#allocation6 + $0x178] sm:$0xff]   ;;  %43 = vst [vmem:[#allocation2] sm:$0xf] %v1097_v18 }
  0x3b   :  { %889 = vmatprep.subr.bf16.mxu1 %v973_v21  ;;  %v1014_v9 = vld [vmem:[#allocation6 + $0x1f8] sm:$0xff]  }
  0x3c   :  { %v1015_v10 = vld [vmem:[#allocation6 + $0x138] sm:$0xff]  }
  0x3d   :  { %868 = vmatpush3.bf16.msra.mxu0 %v974_v25  ;;  %v46_v11 = vld [vmem:[#allocation3 + $0x8] sm:$0xff] }
  0x3e   :  { %890 = vmatpush3.bf16.msra.mxu1 %v975_v26  ;;  %869 = vmatprep.subr.bf16.mxu0 %v976_v27  ;;  %v1016_v12 = vld [vmem:[#allocation6 + $0x1b8] sm:$0xff]   ;;  %v201_v13 = vrot.slane %v46_v11, %v1145_v35  ;;  %v194_v14 = vcombine.high %v46_v11, %v46_v11 }
  0x3f   :  { %891 = vmatprep.subr.bf16.mxu1 %v977_v28 }
  0x40   :  { %v209_v15 = vcombine.high %v201_v13, %v201_v13  ;;  %v208_v16 = vrot.slane %v194_v14, %v1145_v35 }
  0x41   :  { %870 = vmatpush3.bf16.msra.mxu0 %v978_v31  ;;  %v44_v40 = vld [vmem:[#allocation2] sm:$0xf] }
  0x42   :  { %892 = vmatpush3.bf16.msra.mxu1 %v979_v32  ;;  %871 = vmatprep.subr.bf16.mxu0 %v980_v33  ;;  %v210_v17 = vcombine.high %v208_v16, %v208_v16 }
  0x43   :  { %893 = vmatprep.subr.bf16.mxu1 %v981_v34 }
  0x45   :  { %872 = vmatpush3.bf16.msra.mxu0 %v982_v36 }
  0x46   :  { %894 = vmatpush3.bf16.msra.mxu1 %v983_v37  ;;  %901 = vmatprep.subr.bf16.mxu0 %v985_v41 }
  0x47   :  { %923 = vmatprep.subr.bf16.mxu1 %v986_v42 }
  0x48   :  { %636 = vmatmul.mubr.bf16.vlgmr.msra.gmra.mrb[0].mxu0 %v184_v39 }
  0x49   :  { %902 = vmatpush3.bf16.msra.mxu0 %v987_v45  ;;  %676 = vmatmul.mubr.bf16.vlgmr.msra.gmra.mrb[0].mxu1 %v191_v44 }
  0x4a   :  { %903 = vmatprep.subr.bf16.mxu0 %v989_v48  ;;  %924 = vmatpush3.bf16.msra.mxu1 %v988_v46 }
  0x4b   :  { %925 = vmatprep.subr.bf16.mxu1 %v990_v49  ;;  %715 = vmatprep.mubr.bf16.mxu0 %v209_v15 }
  0x4c   :  { %755 = vmatprep.mubr.bf16.mxu1 %v210_v17 }
  0x4d   :  { %904 = vmatpush3.bf16.msra.mxu0 %v991_v50 }
  0x4e   :  { %905 = vmatprep.subr.bf16.mxu0 %v993_v52  ;;  %926 = vmatpush3.bf16.msra.mxu1 %v992_v51 }
  0x4f   :  { %927 = vmatprep.subr.bf16.mxu1 %v994_v53 }
  0x51   :  { %906 = vmatpush3.bf16.msra.mxu0 %v995_v54 }
  0x52   :  { %907 = vmatprep.subr.bf16.mxu0 %v997_v56  ;;  %928 = vmatpush3.bf16.msra.mxu1 %v996_v55 }
  0x53   :  { %929 = vmatprep.subr.bf16.mxu1 %v998_v57 }
  0x55   :  { %908 = vmatpush3.bf16.msra.mxu0 %v999_v58 }
  0x56   :  { %909 = vmatprep.subr.bf16.mxu0 %v1001_v60  ;;  %930 = vmatpush3.bf16.msra.mxu1 %v1000_v59 }
  0x57   :  { %931 = vmatprep.subr.bf16.mxu1 %v1002_v61 }
  0x59   :  { %910 = vmatpush3.bf16.msra.mxu0 %v1003_v62 }
  0x5a   :  { %911 = vmatprep.subr.bf16.mxu0 %v1005_v0  ;;  %932 = vmatpush3.bf16.msra.mxu1 %v1004_v63 }
  0x5b   :  { %933 = vmatprep.subr.bf16.mxu1 %v1006_v1 }
  0x5d   :  { %912 = vmatpush3.bf16.msra.mxu0 %v1007_v2 }
  0x5e   :  { %913 = vmatprep.subr.bf16.mxu0 %v1009_v4  ;;  %934 = vmatpush3.bf16.msra.mxu1 %v1008_v3 }
  0x5f   :  { %935 = vmatprep.subr.bf16.mxu1 %v1010_v5 }
  0x61   :  { %914 = vmatpush3.bf16.msra.mxu0 %v1011_v6 }
  0x62   :  { %915 = vmatprep.subr.bf16.mxu0 %v1013_v8  ;;  %936 = vmatpush3.bf16.msra.mxu1 %v1012_v7 }
  0x63   :  { %937 = vmatprep.subr.bf16.mxu1 %v1014_v9 }
  0x65   :  { %916 = vmatpush3.bf16.msra.mxu0 %v1015_v10 }
  0x66   :  { %938 = vmatpush3.bf16.msra.mxu1 %v1016_v12 }
  0x68   :  { %716 = vmatmul.mubr.bf16.vlgmr.msra.gmra.mrb[4].mxu0 %v201_v13 }
  0x69   :  { %756 = vmatmul.mubr.bf16.vlgmr.msra.gmra.mrb[4].mxu1 %v208_v16 }
 0x11b   :  { %v873_v19 = vpop.f32.mrb[0].mxu0 }
 0x11c   :  { %v874_v20 = vpop.f32.mrb[1].mxu0  ;;  %v895_v21 = vpop.f32.mrb[0].mxu1 }
 0x11d   :  { %v875_v22 = vadd.f32 %v874_v20, %v873_v19  ;;  %v876_v23 = vpop.f32.mrb[2].mxu0  ;;  %v896_v24 = vpop.f32.mrb[1].mxu1 }
 0x11e   :  { %v877_v25 = vpop.f32.mrb[3].mxu0  ;;  %v897_v26 = vadd.f32 %v896_v24, %v895_v21  ;;  %v898_v27 = vpop.f32.mrb[2].mxu1 }
 0x11f   :  { %v899_v28 = vpop.f32.mrb[3].mxu1 }
 0x120   :  { %v678_v29 = vadd.f32 %v897_v26, %v875_v22 }
 0x13b   :  { %v917_v30 = vpop.f32.mrb[4].mxu0 }
 0x13c   :  { %v918_v31 = vpop.f32.mrb[5].mxu0  ;;  %v939_v32 = vpop.f32.mrb[4].mxu1 }
 0x13d   :  { %v919_v33 = vadd.f32 %v918_v31, %v917_v30  ;;  %v920_v34 = vpop.f32.mrb[6].mxu0  ;;  %v940_v35 = vpop.f32.mrb[5].mxu1 }
 0x13e   :  { %v921_v36 = vpop.f32.mrb[7].mxu0  ;;  %v941_v38 = vadd.f32 %v940_v35, %v939_v32  ;;  %v942_v39 = vpop.f32.mrb[6].mxu1 }
 0x13f   :  { %v718_v37 = vadd.f32 %v919_v33, %v678_v29  ;;  %v943_v41 = vpop.f32.mrb[7].mxu1 }
 0x141   :  { %v758_v42 = vadd.f32 %v941_v38, %v718_v37 }
 0x143   :  { %v763_v43 = vadd.f32 %v758_v42, %v44_v40 }
 0x145   :  { %764 = vst [vmem:[#allocation2] sm:$0xf] %v763_v43 }
 0x14c   :  { %v768_v44 = vld [vmem:[#allocation2] sm:$0xf] }
 0x14d   :  { %v769_v45 = vmul.f32 %v768_v44, %v768_v44 }
 0x14f   :  { %v771_v46 = vsel %vm770_vm0, %v769_v45, 0.0 }
 0x150   :  { %772 = vadd.xlane.f32.xlu0 %v771_v46 }
 0x1dd   :  { %v773_v47 = vpop.xlane.xlu0 %772 }
 0x1de   :  { %1018 = vrsqrt.f32 %v773_v47 }
 0x1e8   :  { %v1019_v48 = vpop.eup %1018 }
 0x1e9   :  { %v775_v49 = vmul.f32 %v1019_v48, %v768_v44 }
 0x1eb   :  { %776 = vst [vmem:[#allocation8] sm:$0xf] %v775_v49 }
 0x1ec   :  { %1075 = shalt.err (!%p1072_p6)
}
 0x1ed   :  { %s1076_s10 = scalar_lea.hbm %s1165_s2, 64 }
 0x1ee   :  { %p1077_p7 = scmp.ne.s32.totalorder %s1165_s2, %s1076_s10  ;;  %p1080_p8 = scmp.lt.u32.totalorder %s1076_s10, %s1165_s2 }
 0x1f0   :  { %p1082_p9 = pnand %p1080_p8, %p1077_p7 }
 0x1f2   :  { %1085 = shalt.err (!%p1082_p9)
}
 0x1f3   :  { %786 = dma.vmem_to_hbm [thread:$0]  %s784_s6, 64, %s1165_s2, [#allocation5]  }
 0x1f4   :  { %1090 = dma.done.wait [#allocation5], 64  }
 0x1f5   :  { %1091 = vsyncadd [#allocation5], 4294967232 }
 0x1f6   :  { %790 = vsyncpa [#allocation4], 1 }
 0x1f7   :  { %791 = vsyncpa [#allocation7], 1 }
 0x1f8   :  { %792 = vsyncpa [#allocation5], 1 }

</bundles_post_ra>
